<compile_context>
chip_gen: v7x
topology: tpu7x:2x2x1
jax: 0.10.0
libtpu: 0.0.40
codegen_flags: <defaults>
</compile_context>

<pallas_src>
import numpy as np
import jax
import jax.numpy as jnp
from jax.experimental import pallas as pl
from jax.experimental.pallas import tpu as pltpu


def _round_up(a, m):
    return ((a + m - 1) // m) * m


# ----------------------------------------------------------------------------
# Pallas kernels
# ----------------------------------------------------------------------------
def _conv1x1_relu_kernel(x_ref, w_ref, b_ref, o_ref):
    """Channels-first 1x1 conv + ReLU.
    x_ref: (BV, Cin, TP) VMEM, w_ref: (Cin, Cf) SMEM, b_ref: (Cf,) SMEM, o_ref: (BV, Cf, TP).
    Pixels live on the 128-lane axis (lane-dense loads/stores); the Cin*Cf FMAs are
    scalar-broadcast VPU ops -- no MXU."""
    x = x_ref[...]
    cin = x.shape[1]
    cf = o_ref.shape[1]
    for f in range(cf):
        acc = x[:, 0:1, :] * w_ref[0, f]
        for c in range(1, cin):
            acc = acc + x[:, c:c + 1, :] * w_ref[c, f]
        o_ref[:, f:f + 1, :] = jnp.maximum(acc + b_ref[f], 0.0)


def pallas_conv1x1_relu(images, w, b, *, tile_pix=2048):
    """Backbone 1x1 conv + ReLU, channels-first (no transpose of the NCHW input needed)."""
    B, V, Cin, H, W = images.shape
    Cf = w.shape[1]
    HW = H * W
    x = images.reshape(B * V, Cin, HW).astype(jnp.float32)
    tp = min(tile_pix, _round_up(HW, 128))
    hw_pad = _round_up(HW, tp)
    if hw_pad != HW:
        x = jnp.pad(x, ((0, 0), (0, 0), (0, hw_pad - HW)))
    out = pl.pallas_call(
        _conv1x1_relu_kernel,
        out_shape=jax.ShapeDtypeStruct((B * V, Cf, hw_pad), jnp.float32),
        grid=(hw_pad // tp,),
        in_specs=[pl.BlockSpec((B * V, Cin, tp), lambda j: (0, 0, j)),
                  pl.BlockSpec(memory_space=pltpu.MemorySpace.SMEM),
                  pl.BlockSpec(memory_space=pltpu.MemorySpace.SMEM)],
        out_specs=pl.BlockSpec((B * V, Cf, tp), lambda j: (0, 0, j)),
        compiler_params=pltpu.CompilerParams(
            dimension_semantics=("parallel",),
            vmem_limit_bytes=32 * 1024 * 1024),
    )(x, w, b)
    if hw_pad != HW:
        out = out[:, :, :HW]
    return out.reshape(B, V, Cf, H, W)


def _refine_head_loss_kernel(x_ref, gt_ref, m_ref,
                             w1_ref, b1_ref, w2_ref, b2_ref, wh_ref, bh_ref,
                             stats_ref):
    """Fused per-voxel refiner MLP + Twin_Head + twin-loss partial reduction.

    Transposed (features x voxels) layout so voxels sit on the 128-lane axis:
      x_ref: (din, tile)   gt_ref / m_ref: (1, tile)
    Predictions never go to HBM; each grid step writes only an (8,128) slab of partial sums."""
    x = x_ref[...]
    h = jnp.dot(w1_ref[...], x, preferred_element_type=jnp.float32) + b1_ref[...]
    h = jnp.maximum(h, 0.0)
    h = jnp.dot(w2_ref[...], h, preferred_element_type=jnp.float32) + b2_ref[...]
    h = jnp.maximum(h, 0.0)
    head = jnp.dot(wh_ref[...], h, preferred_element_type=jnp.float32) + bh_ref[...]  # (8, tile)
    pred = head[0:1, :]                       # (1, tile) lane-dense
    logit = head[1:2, :]
    gt = gt_ref[...]
    m = m_ref[...]
    y = jnp.where(jnp.abs(gt) < 0.999, 1.0, 0.0) * m            # occupancy on valid rows
    # stable softplus(-x); jnp.log(1+e) kept (instead of log1p) for guaranteed Mosaic lowering
    sp = jnp.maximum(-logit, 0.0) + jnp.log(1.0 + jnp.exp(-jnp.abs(logit)))
    lt_p = jnp.sign(pred) * jnp.log(1.0 + jnp.abs(pred))        # log_transform
    lt_g = jnp.sign(gt) * jnp.log(1.0 + jnp.abs(gt))
    s1 = jnp.sum(m * ((1.0 - y) * logit + sp))                  # base BCE term
    s2 = jnp.sum(y * sp)                                        # positive term (pos_weight)
    sy = jnp.sum(y)                                             # occupied count
    s3 = jnp.sum(y * jnp.abs(lt_p - lt_g))                      # masked L1(log_transform)
    nv = jnp.sum(m)                                             # valid count
    row = jax.lax.broadcasted_iota(jnp.int32, (8, 128), 0)
    slab = jnp.zeros((8, 128), jnp.float32)
    for i, v in enumerate((s1, s2, sy, s3, nv)):
        slab = jnp.where(row == i, v, slab)
    stats_ref[...] = slab[None, :, :]


def pallas_refine_head_loss(x, gt, valid, params, *, tile_n=2048):
    """Fused Refiner + Twin_Head + loss.  Returns (bce, l1) scalars; per-tile partial sums are
    combined outside the kernel (megacore-safe 'parallel' grid, no serialized accumulation)."""
    w1t, b1c, w2t, b2c, wht, bhc = params
    n, din = x.shape
    dh = w1t.shape[0]
    if valid is None:
        valid = jnp.ones((n,), jnp.float32)
    tile = min(tile_n, _round_up(n, 128))
    n_pad = _round_up(n, tile)
    pad = n_pad - n
    x_cf = jnp.pad(x.astype(jnp.float32).T, ((0, 0), (0, pad)))            # (din, n_pad)
    gt_r = jnp.pad(gt.reshape(1, -1).astype(jnp.float32), ((0, 0), (0, pad)))
    m_r = jnp.pad(valid.reshape(1, -1).astype(jnp.float32), ((0, 0), (0, pad)))
    g = n_pad // tile
    stats = pl.pallas_call(
        _refine_head_loss_kernel,
        out_shape=jax.ShapeDtypeStruct((g, 8, 128), jnp.float32),
        grid=(g,),
        in_specs=[pl.BlockSpec((din, tile), lambda i: (0, i)),
                  pl.BlockSpec((1, tile), lambda i: (0, i)),
                  pl.BlockSpec((1, tile), lambda i: (0, i)),
                  pl.BlockSpec((dh, din), lambda i: (0, 0)),
                  pl.BlockSpec((dh, 1), lambda i: (0, 0)),
                  pl.BlockSpec((dh, dh), lambda i: (0, 0)),
                  pl.BlockSpec((dh, 1), lambda i: (0, 0)),
                  pl.BlockSpec((8, dh), lambda i: (0, 0)),
                  pl.BlockSpec((8, 1), lambda i: (0, 0))],
        out_specs=pl.BlockSpec((1, 8, 128), lambda i: (i, 0, 0)),
        compiler_params=pltpu.CompilerParams(
            dimension_semantics=("parallel",),
            vmem_limit_bytes=32 * 1024 * 1024),
    )(x_cf, gt_r, m_r, w1t, b1c, w2t, b2c, wht, bhc)
    s = jnp.sum(stats[:, :, 0], axis=0)                         # combine per-tile partials
    s1, s2, sy, s3, nv = s[0], s[1], s[2], s[3], s[4]
    sy_c = jnp.maximum(sy, 1.0)
    nv_c = jnp.maximum(nv, 1.0)
    pw = (nv - sy) / sy_c                                       # logits_wt(occupancy)
    bce = (s1 + (pw - 1.0) * s2) / nv_c
    l1 = s3 / sy_c
    return bce, l1


# ----------------------------------------------------------------------------
# Glue: backbone, back-projection, coordinate handling
# ----------------------------------------------------------------------------
def backbone(images, conv_w, conv_b):
    """Simplified Backbone.Handle_5: channels-first 1x1 conv + ReLU (Pallas, lane-dense VPU)
    + avg pooling to the coarse / middle scales (channels-last for the gather).
    TODO(synk): pooling stays in XLA (tiny reshape+mean)."""
    B, V, Cin, H, W = images.shape
    Cf = conv_w.shape[1]
    feat = pallas_conv1x1_relu(images, conv_w, conv_b)            # [B,V,Cf,H,W]

    def pool(f, k):   # -> [B,V,H/k,W/k,Cf] channels-last, gather-friendly (tiny tensors)
        p = f.reshape(B, V, Cf, H // k, k, W // k, k).mean(axis=(4, 6))
        return p.transpose(0, 1, 3, 4, 2)

    return pool(feat, 4), pool(feat, 2)                           # (coarse, middle)


def back_project(feature, proj, origins, coords, voxel_size):
    """Voxel_World.Back_project: vectorized projection over all views, one fused gather +
    masked accumulate/average.  Features arrive channels-last -> no transpose here.
    TODO(synk): the per-voxel pixel gather stays in XLA; a Pallas gather with scalar-prefetched
                indices would overlap the index-driven DMAs with the accumulate for large N."""
    B, V, Hs, Ws, C = feature.shape
    N = coords.shape[0]
    b_idx = coords[:, 3]
    xyz = coords[:, :3].astype(jnp.float32) * voxel_size + origins[b_idx]
    hom = jnp.concatenate([xyz, jnp.ones((N, 1), jnp.float32)], axis=1)        # [N,4]

    # project against every batch's matrices (tiny 12-FLOP products), select with a one-hot
    # weighting instead of materializing a per-voxel [N,V,3,4] gather of proj.
    pix_b = jnp.einsum('bvij,nj->bnvi', proj, hom)                             # [B,N,V,3]
    onehot = (b_idx[None, :] == jnp.arange(B)[:, None]).astype(jnp.float32)    # [B,N]
    pix = jnp.einsum('bnvi,bn->nvi', pix_b, onehot)                            # [N,V,3]

    w = pix[..., 2]
    denom = jnp.maximum(w, 1e-6)
    u = pix[..., 0] / denom
    v = pix[..., 1] / denom
    valid = ((w > 1e-3) & (u >= 0) & (u <= Ws - 1) & (v >= 0) & (v <= Hs - 1))
    ui = jnp.clip(jnp.round(u), 0, Ws - 1).astype(jnp.int32)
    vi = jnp.clip(jnp.round(v), 0, Hs - 1).astype(jnp.int32)

    feat_flat = feature.reshape(B * V * Hs * Ws, C)                            # no transpose
    view_ids = jnp.arange(V, dtype=jnp.int32)[None, :]
    flat_idx = (b_idx[:, None] * V + view_ids) * (Hs * Ws) + vi * Ws + ui      # [N,V]
    g = jnp.take(feat_flat, flat_idx.reshape(-1), axis=0).reshape(N, V, C)

    vm = valid.astype(jnp.float32)[..., None]                                  # [N,V,1]
    acc = jnp.sum(vm * g, axis=1)                                              # [N,C]
    cnt = jnp.sum(vm, axis=1)                                                  # [N,1]
    return acc / jnp.maximum(cnt, 1.0), cnt


class MultiViewReconstructionPallas:
    def __init__(self, key, cf=8, dh=16):
        ks = jax.random.split(key, 16)
        s = 0.1
        # weights stored in their final, kernel-ready dtype/shape (no per-call astype/reshape)
        self.conv_w = s * jax.random.normal(ks[0], (3, cf), jnp.float32)       # (Cin, Cf) -> SMEM
        self.conv_b = s * jax.random.normal(ks[1], (cf,), jnp.float32)         # (Cf,)     -> SMEM

        def mk(i):
            # Refiner (2-layer MLP) + Twin_Head, stored transposed for the voxels-on-lanes kernel.
            w1 = s * jax.random.normal(ks[i + 0], (cf, dh), jnp.float32)
            b1 = s * jax.random.normal(ks[i + 1], (dh,), jnp.float32)
            w2 = s * jax.random.normal(ks[i + 2], (dh, dh), jnp.float32)
            b2 = s * jax.random.normal(ks[i + 3], (dh,), jnp.float32)
            wh = s * jax.random.normal(ks[i + 4], (dh, 2), jnp.float32)
            bh = s * jax.random.normal(ks[i + 5], (2,), jnp.float32)
            wht = jnp.zeros((8, dh), jnp.float32).at[:2, :].set(wh.T)          # sublane-padded head
            bhc = jnp.zeros((8, 1), jnp.float32).at[:2, 0].set(bh)
            return (w1.T, b1.reshape(dh, 1), w2.T, b2.reshape(dh, 1), wht, bhc)

        self.params_coarse = mk(2)     # Refiner_coarse + Head_coarse (stand-in for Unet_3d_Sparse)
        self.params_middle = mk(8)     # Refiner_middle + Head_middle (stand-in)
        self.coarse_grid = (4, 4, 4)
        self.vs_coarse = 0.25
        self.vs_middle = 0.125
        self.teacherforce = True

    def world_grid(self, B):
        gx, gy, gz = self.coarse_grid
        xs, ys, zs = np.meshgrid(np.arange(gx), np.arange(gy), np.arange(gz), indexing='ij')
        g = np.stack([xs, ys, zs], axis=-1).reshape(-1, 3)
        out = []
        for b in range(B):
            out.append(np.concatenate([g, np.full((g.shape[0], 1), b)], axis=1))
        return np.concatenate(out, axis=0).astype(np.int32)                    # [B*64, 4]

    @staticmethod
    def upsample_coords(coords, valid):
        offs = jnp.asarray(np.stack(np.meshgrid([0, 1], [0, 1], [0, 1], indexing='ij'),
                                    -1).reshape(-1, 3), jnp.int32)
        xyz = (coords[:, None, :3] * 2 + offs[None, :, :]).reshape(-1, 3)
        bb = jnp.repeat(coords[:, 3:4], 8, axis=0)
        vm = jnp.repeat(valid, 8, axis=0)
        return jnp.concatenate([xyz, bb], axis=1), vm

    def forward(self, Input):
        images = Input['images']
        projections = Input['projections']
        origins = Input['vol_origin']
        tsdf_list = Input['tsdf_list']
        B = images.shape[0]

        feat_coarse, feat_middle = backbone(images, self.conv_w, self.conv_b)

        # --------------- coarse scale ---------------
        coords_c = jnp.asarray(self.world_grid(B))
        tsdf_c = tsdf_list[2]
        proj_c = projections[:, :, 2]
        vol_c, _ = back_project(feat_coarse, proj_c, origins, coords_c, self.vs_coarse)
        gt_c = tsdf_c[coords_c[:, 3], coords_c[:, 0], coords_c[:, 1], coords_c[:, 2]]
        # fused Refiner_coarse + Head_coarse + loss_occ (BCE-with-logits, pos_weight)
        coarse_bce, _ = pallas_refine_head_loss(vol_c, gt_c, None, self.params_coarse)
        coarse_loss = coarse_bce

        # ---- teacher-forced selection of occupied coarse voxels (device-side, fixed size) ----
        occ = jnp.abs(gt_c) < 1.0
        Nc = coords_c.shape[0]
        cap = min(8192 * B, Nc)
        sel_idx = jnp.nonzero(occ, size=cap, fill_value=0)[0]
        n_occ = jnp.minimum(jnp.sum(occ.astype(jnp.int32)), cap)
        sel_valid = (jnp.arange(cap) < n_occ).astype(jnp.float32)
        sel_coords = coords_c[sel_idx]
        coords_m, valid_m = self.upsample_coords(sel_coords, sel_valid)

        # --------------- middle scale ---------------
        tsdf_m = tsdf_list[1]
        proj_m = projections[:, :, 1]
        vol_m, _ = back_project(feat_middle, proj_m, origins, coords_m, self.vs_middle)
        gt_m = tsdf_m[coords_m[:, 3], coords_m[:, 0], coords_m[:, 1], coords_m[:, 2]]
        # fused Refiner_middle + Head_middle + loss_tsdf (BCE + masked L1 of log_transform)
        mid_bce, mid_l1 = pallas_refine_head_loss(vol_m, gt_m, valid_m, self.params_middle)
        fine_loss = mid_l1 + mid_bce

        return fine_loss + coarse_loss


# ----------------------------------------------------------------------------
# Main
# ----------------------------------------------------------------------------
def make_projections(B, V):
    P = np.zeros((B, V, 3, 3, 4), np.float32)
    scale_f = {1: 7.0, 2: 3.0}       # middle feature map 8x8, coarse feature map 4x4
    for s, f in scale_f.items():
        for b in range(B):
            for v in range(V):
                M = np.zeros((3, 4), np.float32)
                M[0, 0] = f
                M[0, 3] = 0.3 + 0.1 * v
                M[1, 1] = f
                M[1, 3] = 0.3 + 0.05 * b
                M[2, 3] = 1.0
                P[b, v, s] = M
    return jnp.asarray(P)


if __name__ == "__main__":
    key = jax.random.PRNGKey(0)
    k_img, k_tc, k_tm, k_params = jax.random.split(key, 4)

    B, V, Cin, H, W = 2, 2, 3, 16, 16
    images = jax.random.uniform(k_img, (B, V, Cin, H, W), jnp.float32)
    projections = make_projections(B, V)                      # [B, V, 3 scales, 3, 4]
    vol_origin = jnp.zeros((B, 3), jnp.float32)
    tsdf_fine = jnp.zeros((B, 16, 16, 16), jnp.float32)       # unused (scale 0)
    tsdf_middle = jax.random.uniform(k_tm, (B, 8, 8, 8), jnp.float32, -1.0, 1.0)
    tsdf_coarse = jax.random.uniform(k_tc, (B, 4, 4, 4), jnp.float32, -1.0, 1.0)

    Input = {
        'images': images,
        'projections': projections,
        'vol_origin': vol_origin,
        'tsdf_list': [tsdf_fine, tsdf_middle, tsdf_coarse],
    }

    model = MultiViewReconstructionPallas(k_params)
    loss = model.forward(Input)
    loss = jax.block_until_ready(loss)
    assert np.isfinite(float(loss)), "loss is not finite"
    print("KERNEL_OK")
</pallas_src>

<mosaic_0001>
module attributes {stable_mosaic.version = 11 : i64} {
  func.func @_conv1x1_relu_kernel(%arg0: i32, %arg1: memref<4x3x256xf32, #tpu.memory_space<vmem>>, %arg2: memref<3x8xf32, #tpu.memory_space<smem>>, %arg3: memref<8xf32, #tpu.memory_space<smem>>, %arg4: memref<4x8x256xf32, #tpu.memory_space<vmem>>) attributes {dimension_semantics = [#tpu.dimension_semantics<parallel>], iteration_bounds = array<i64: 1>, scalar_prefetch = 0 : i64, scratch_operands = 0 : i64, tpu.core_type = #tpu.core_type<tc>, window_params = [{transform_indices = @transform_0, window_bounds = array<i64: 4, 3, 256>}, {transform_indices = @transform_1, window_bounds = array<i64: 3, 8>}, {transform_indices = @transform_2, window_bounds = array<i64: 8>}, {transform_indices = @transform_3, window_bounds = array<i64: 4, 8, 256>}]} {
    %c0 = arith.constant 0 : index
    %c0_0 = arith.constant 0 : index
    %c0_1 = arith.constant 0 : index
    %0 = vector.load %arg1[%c0, %c0_0, %c0_1] : memref<4x3x256xf32, #tpu.memory_space<vmem>>, vector<4x3x256xf32>
    %1 = vector.extract_strided_slice %0 {offsets = [0, 0, 0], sizes = [4, 1, 256], strides = [1, 1, 1]} : vector<4x3x256xf32> to vector<4x1x256xf32>
    %c0_2 = arith.constant 0 : index
    %c0_3 = arith.constant 0 : index
    %2 = memref.load %arg2[%c0_2, %c0_3] : memref<3x8xf32, #tpu.memory_space<smem>>
    %3 = vector.broadcast %2 : f32 to vector<4x1x256xf32>
    %4 = arith.mulf %1, %3 : vector<4x1x256xf32>
    %5 = vector.extract_strided_slice %0 {offsets = [0, 1, 0], sizes = [4, 1, 256], strides = [1, 1, 1]} : vector<4x3x256xf32> to vector<4x1x256xf32>
    %c1 = arith.constant 1 : index
    %c0_4 = arith.constant 0 : index
    %6 = memref.load %arg2[%c1, %c0_4] : memref<3x8xf32, #tpu.memory_space<smem>>
    %7 = vector.broadcast %6 : f32 to vector<4x1x256xf32>
    %8 = arith.mulf %5, %7 : vector<4x1x256xf32>
    %9 = arith.addf %4, %8 : vector<4x1x256xf32>
    %10 = vector.extract_strided_slice %0 {offsets = [0, 2, 0], sizes = [4, 1, 256], strides = [1, 1, 1]} : vector<4x3x256xf32> to vector<4x1x256xf32>
    %c2 = arith.constant 2 : index
    %c0_5 = arith.constant 0 : index
    %11 = memref.load %arg2[%c2, %c0_5] : memref<3x8xf32, #tpu.memory_space<smem>>
    %12 = vector.broadcast %11 : f32 to vector<4x1x256xf32>
    %13 = arith.mulf %10, %12 : vector<4x1x256xf32>
    %14 = arith.addf %9, %13 : vector<4x1x256xf32>
    %c0_6 = arith.constant 0 : index
    %15 = memref.load %arg3[%c0_6] : memref<8xf32, #tpu.memory_space<smem>>
    %16 = vector.broadcast %15 : f32 to vector<4x1x256xf32>
    %17 = arith.addf %14, %16 : vector<4x1x256xf32>
    %cst = arith.constant 0.000000e+00 : f32
    %18 = vector.broadcast %cst : f32 to vector<4x1x256xf32>
    %19 = arith.maximumf %17, %18 : vector<4x1x256xf32>
    %c0_7 = arith.constant 0 : index
    %c0_8 = arith.constant 0 : index
    %c0_9 = arith.constant 0 : index
    %20 = vector.load %arg4[%c0_7, %c0_8, %c0_9] : memref<4x8x256xf32, #tpu.memory_space<vmem>>, vector<4x1x256xf32>
    tpu.vector_store %arg4[%c0_7, %c0_8, %c0_9], %19 {strides = array<i32>} : memref<4x8x256xf32, #tpu.memory_space<vmem>>, vector<4x1x256xf32>,
    %21 = vector.extract_strided_slice %0 {offsets = [0, 0, 0], sizes = [4, 1, 256], strides = [1, 1, 1]} : vector<4x3x256xf32> to vector<4x1x256xf32>
    %c0_10 = arith.constant 0 : index
    %c1_11 = arith.constant 1 : index
    %22 = memref.load %arg2[%c0_10, %c1_11] : memref<3x8xf32, #tpu.memory_space<smem>>
    %23 = vector.broadcast %22 : f32 to vector<4x1x256xf32>
    %24 = arith.mulf %21, %23 : vector<4x1x256xf32>
    %25 = vector.extract_strided_slice %0 {offsets = [0, 1, 0], sizes = [4, 1, 256], strides = [1, 1, 1]} : vector<4x3x256xf32> to vector<4x1x256xf32>
    %c1_12 = arith.constant 1 : index
    %c1_13 = arith.constant 1 : index
    %26 = memref.load %arg2[%c1_12, %c1_13] : memref<3x8xf32, #tpu.memory_space<smem>>
    %27 = vector.broadcast %26 : f32 to vector<4x1x256xf32>
    %28 = arith.mulf %25, %27 : vector<4x1x256xf32>
    %29 = arith.addf %24, %28 : vector<4x1x256xf32>
    %30 = vector.extract_strided_slice %0 {offsets = [0, 2, 0], sizes = [4, 1, 256], strides = [1, 1, 1]} : vector<4x3x256xf32> to vector<4x1x256xf32>
    %c2_14 = arith.constant 2 : index
    %c1_15 = arith.constant 1 : index
    %31 = memref.load %arg2[%c2_14, %c1_15] : memref<3x8xf32, #tpu.memory_space<smem>>
    %32 = vector.broadcast %31 : f32 to vector<4x1x256xf32>
    %33 = arith.mulf %30, %32 : vector<4x1x256xf32>
    %34 = arith.addf %29, %33 : vector<4x1x256xf32>
    %c1_16 = arith.constant 1 : index
    %35 = memref.load %arg3[%c1_16] : memref<8xf32, #tpu.memory_space<smem>>
    %36 = vector.broadcast %35 : f32 to vector<4x1x256xf32>
    %37 = arith.addf %34, %36 : vector<4x1x256xf32>
    %cst_17 = arith.constant 0.000000e+00 : f32
    %38 = vector.broadcast %cst_17 : f32 to vector<4x1x256xf32>
    %39 = arith.maximumf %37, %38 : vector<4x1x256xf32>
    %c0_18 = arith.constant 0 : index
    %c1_19 = arith.constant 1 : index
    %c0_20 = arith.constant 0 : index
    %40 = vector.load %arg4[%c0_18, %c1_19, %c0_20] : memref<4x8x256xf32, #tpu.memory_space<vmem>>, vector<4x1x256xf32>
    tpu.vector_store %arg4[%c0_18, %c1_19, %c0_20], %39 {strides = array<i32>} : memref<4x8x256xf32, #tpu.memory_space<vmem>>, vector<4x1x256xf32>,
    %41 = vector.extract_strided_slice %0 {offsets = [0, 0, 0], sizes = [4, 1, 256], strides = [1, 1, 1]} : vector<4x3x256xf32> to vector<4x1x256xf32>
    %c0_21 = arith.constant 0 : index
    %c2_22 = arith.constant 2 : index
    %42 = memref.load %arg2[%c0_21, %c2_22] : memref<3x8xf32, #tpu.memory_space<smem>>
    %43 = vector.broadcast %42 : f32 to vector<4x1x256xf32>
    %44 = arith.mulf %41, %43 : vector<4x1x256xf32>
    %45 = vector.extract_strided_slice %0 {offsets = [0, 1, 0], sizes = [4, 1, 256], strides = [1, 1, 1]} : vector<4x3x256xf32> to vector<4x1x256xf32>
    %c1_23 = arith.constant 1 : index
    %c2_24 = arith.constant 2 : index
    %46 = memref.load %arg2[%c1_23, %c2_24] : memref<3x8xf32, #tpu.memory_space<smem>>
    %47 = vector.broadcast %46 : f32 to vector<4x1x256xf32>
    %48 = arith.mulf %45, %47 : vector<4x1x256xf32>
    %49 = arith.addf %44, %48 : vector<4x1x256xf32>
    %50 = vector.extract_strided_slice %0 {offsets = [0, 2, 0], sizes = [4, 1, 256], strides = [1, 1, 1]} : vector<4x3x256xf32> to vector<4x1x256xf32>
    %c2_25 = arith.constant 2 : index
    %c2_26 = arith.constant 2 : index
    %51 = memref.load %arg2[%c2_25, %c2_26] : memref<3x8xf32, #tpu.memory_space<smem>>
    %52 = vector.broadcast %51 : f32 to vector<4x1x256xf32>
    %53 = arith.mulf %50, %52 : vector<4x1x256xf32>
    %54 = arith.addf %49, %53 : vector<4x1x256xf32>
    %c2_27 = arith.constant 2 : index
    %55 = memref.load %arg3[%c2_27] : memref<8xf32, #tpu.memory_space<smem>>
    %56 = vector.broadcast %55 : f32 to vector<4x1x256xf32>
    %57 = arith.addf %54, %56 : vector<4x1x256xf32>
    %cst_28 = arith.constant 0.000000e+00 : f32
    %58 = vector.broadcast %cst_28 : f32 to vector<4x1x256xf32>
    %59 = arith.maximumf %57, %58 : vector<4x1x256xf32>
    %c0_29 = arith.constant 0 : index
    %c2_30 = arith.constant 2 : index
    %c0_31 = arith.constant 0 : index
    %60 = vector.load %arg4[%c0_29, %c2_30, %c0_31] : memref<4x8x256xf32, #tpu.memory_space<vmem>>, vector<4x1x256xf32>
    tpu.vector_store %arg4[%c0_29, %c2_30, %c0_31], %59 {strides = array<i32>} : memref<4x8x256xf32, #tpu.memory_space<vmem>>, vector<4x1x256xf32>,
    %61 = vector.extract_strided_slice %0 {offsets = [0, 0, 0], sizes = [4, 1, 256], strides = [1, 1, 1]} : vector<4x3x256xf32> to vector<4x1x256xf32>
    %c0_32 = arith.constant 0 : index
    %c3 = arith.constant 3 : index
    %62 = memref.load %arg2[%c0_32, %c3] : memref<3x8xf32, #tpu.memory_space<smem>>
    %63 = vector.broadcast %62 : f32 to vector<4x1x256xf32>
    %64 = arith.mulf %61, %63 : vector<4x1x256xf32>
    %65 = vector.extract_strided_slice %0 {offsets = [0, 1, 0], sizes = [4, 1, 256], strides = [1, 1, 1]} : vector<4x3x256xf32> to vector<4x1x256xf32>
    %c1_33 = arith.constant 1 : index
    %c3_34 = arith.constant 3 : index
    %66 = memref.load %arg2[%c1_33, %c3_34] : memref<3x8xf32, #tpu.memory_space<smem>>
    %67 = vector.broadcast %66 : f32 to vector<4x1x256xf32>
    %68 = arith.mulf %65, %67 : vector<4x1x256xf32>
    %69 = arith.addf %64, %68 : vector<4x1x256xf32>
    %70 = vector.extract_strided_slice %0 {offsets = [0, 2, 0], sizes = [4, 1, 256], strides = [1, 1, 1]} : vector<4x3x256xf32> to vector<4x1x256xf32>
    %c2_35 = arith.constant 2 : index
    %c3_36 = arith.constant 3 : index
    %71 = memref.load %arg2[%c2_35, %c3_36] : memref<3x8xf32, #tpu.memory_space<smem>>
    %72 = vector.broadcast %71 : f32 to vector<4x1x256xf32>
    %73 = arith.mulf %70, %72 : vector<4x1x256xf32>
    %74 = arith.addf %69, %73 : vector<4x1x256xf32>
    %c3_37 = arith.constant 3 : index
    %75 = memref.load %arg3[%c3_37] : memref<8xf32, #tpu.memory_space<smem>>
    %76 = vector.broadcast %75 : f32 to vector<4x1x256xf32>
    %77 = arith.addf %74, %76 : vector<4x1x256xf32>
    %cst_38 = arith.constant 0.000000e+00 : f32
    %78 = vector.broadcast %cst_38 : f32 to vector<4x1x256xf32>
    %79 = arith.maximumf %77, %78 : vector<4x1x256xf32>
    %c0_39 = arith.constant 0 : index
    %c3_40 = arith.constant 3 : index
    %c0_41 = arith.constant 0 : index
    %80 = vector.load %arg4[%c0_39, %c3_40, %c0_41] : memref<4x8x256xf32, #tpu.memory_space<vmem>>, vector<4x1x256xf32>
    tpu.vector_store %arg4[%c0_39, %c3_40, %c0_41], %79 {strides = array<i32>} : memref<4x8x256xf32, #tpu.memory_space<vmem>>, vector<4x1x256xf32>,
    %81 = vector.extract_strided_slice %0 {offsets = [0, 0, 0], sizes = [4, 1, 256], strides = [1, 1, 1]} : vector<4x3x256xf32> to vector<4x1x256xf32>
    %c0_42 = arith.constant 0 : index
    %c4 = arith.constant 4 : index
    %82 = memref.load %arg2[%c0_42, %c4] : memref<3x8xf32, #tpu.memory_space<smem>>
    %83 = vector.broadcast %82 : f32 to vector<4x1x256xf32>
    %84 = arith.mulf %81, %83 : vector<4x1x256xf32>
    %85 = vector.extract_strided_slice %0 {offsets = [0, 1, 0], sizes = [4, 1, 256], strides = [1, 1, 1]} : vector<4x3x256xf32> to vector<4x1x256xf32>
    %c1_43 = arith.constant 1 : index
    %c4_44 = arith.constant 4 : index
    %86 = memref.load %arg2[%c1_43, %c4_44] : memref<3x8xf32, #tpu.memory_space<smem>>
    %87 = vector.broadcast %86 : f32 to vector<4x1x256xf32>
    %88 = arith.mulf %85, %87 : vector<4x1x256xf32>
    %89 = arith.addf %84, %88 : vector<4x1x256xf32>
    %90 = vector.extract_strided_slice %0 {offsets = [0, 2, 0], sizes = [4, 1, 256], strides = [1, 1, 1]} : vector<4x3x256xf32> to vector<4x1x256xf32>
    %c2_45 = arith.constant 2 : index
    %c4_46 = arith.constant 4 : index
    %91 = memref.load %arg2[%c2_45, %c4_46] : memref<3x8xf32, #tpu.memory_space<smem>>
    %92 = vector.broadcast %91 : f32 to vector<4x1x256xf32>
    %93 = arith.mulf %90, %92 : vector<4x1x256xf32>
    %94 = arith.addf %89, %93 : vector<4x1x256xf32>
    %c4_47 = arith.constant 4 : index
    %95 = memref.load %arg3[%c4_47] : memref<8xf32, #tpu.memory_space<smem>>
    %96 = vector.broadcast %95 : f32 to vector<4x1x256xf32>
    %97 = arith.addf %94, %96 : vector<4x1x256xf32>
    %cst_48 = arith.constant 0.000000e+00 : f32
    %98 = vector.broadcast %cst_48 : f32 to vector<4x1x256xf32>
    %99 = arith.maximumf %97, %98 : vector<4x1x256xf32>
    %c0_49 = arith.constant 0 : index
    %c4_50 = arith.constant 4 : index
    %c0_51 = arith.constant 0 : index
    %100 = vector.load %arg4[%c0_49, %c4_50, %c0_51] : memref<4x8x256xf32, #tpu.memory_space<vmem>>, vector<4x1x256xf32>
    tpu.vector_store %arg4[%c0_49, %c4_50, %c0_51], %99 {strides = array<i32>} : memref<4x8x256xf32, #tpu.memory_space<vmem>>, vector<4x1x256xf32>,
    %101 = vector.extract_strided_slice %0 {offsets = [0, 0, 0], sizes = [4, 1, 256], strides = [1, 1, 1]} : vector<4x3x256xf32> to vector<4x1x256xf32>
    %c0_52 = arith.constant 0 : index
    %c5 = arith.constant 5 : index
    %102 = memref.load %arg2[%c0_52, %c5] : memref<3x8xf32, #tpu.memory_space<smem>>
    %103 = vector.broadcast %102 : f32 to vector<4x1x256xf32>
    %104 = arith.mulf %101, %103 : vector<4x1x256xf32>
    %105 = vector.extract_strided_slice %0 {offsets = [0, 1, 0], sizes = [4, 1, 256], strides = [1, 1, 1]} : vector<4x3x256xf32> to vector<4x1x256xf32>
    %c1_53 = arith.constant 1 : index
    %c5_54 = arith.constant 5 : index
    %106 = memref.load %arg2[%c1_53, %c5_54] : memref<3x8xf32, #tpu.memory_space<smem>>
    %107 = vector.broadcast %106 : f32 to vector<4x1x256xf32>
    %108 = arith.mulf %105, %107 : vector<4x1x256xf32>
    %109 = arith.addf %104, %108 : vector<4x1x256xf32>
    %110 = vector.extract_strided_slice %0 {offsets = [0, 2, 0], sizes = [4, 1, 256], strides = [1, 1, 1]} : vector<4x3x256xf32> to vector<4x1x256xf32>
    %c2_55 = arith.constant 2 : index
    %c5_56 = arith.constant 5 : index
    %111 = memref.load %arg2[%c2_55, %c5_56] : memref<3x8xf32, #tpu.memory_space<smem>>
    %112 = vector.broadcast %111 : f32 to vector<4x1x256xf32>
    %113 = arith.mulf %110, %112 : vector<4x1x256xf32>
    %114 = arith.addf %109, %113 : vector<4x1x256xf32>
    %c5_57 = arith.constant 5 : index
    %115 = memref.load %arg3[%c5_57] : memref<8xf32, #tpu.memory_space<smem>>
    %116 = vector.broadcast %115 : f32 to vector<4x1x256xf32>
    %117 = arith.addf %114, %116 : vector<4x1x256xf32>
    %cst_58 = arith.constant 0.000000e+00 : f32
    %118 = vector.broadcast %cst_58 : f32 to vector<4x1x256xf32>
    %119 = arith.maximumf %117, %118 : vector<4x1x256xf32>
    %c0_59 = arith.constant 0 : index
    %c5_60 = arith.constant 5 : index
    %c0_61 = arith.constant 0 : index
    %120 = vector.load %arg4[%c0_59, %c5_60, %c0_61] : memref<4x8x256xf32, #tpu.memory_space<vmem>>, vector<4x1x256xf32>
    tpu.vector_store %arg4[%c0_59, %c5_60, %c0_61], %119 {strides = array<i32>} : memref<4x8x256xf32, #tpu.memory_space<vmem>>, vector<4x1x256xf32>,
    %121 = vector.extract_strided_slice %0 {offsets = [0, 0, 0], sizes = [4, 1, 256], strides = [1, 1, 1]} : vector<4x3x256xf32> to vector<4x1x256xf32>
    %c0_62 = arith.constant 0 : index
    %c6 = arith.constant 6 : index
    %122 = memref.load %arg2[%c0_62, %c6] : memref<3x8xf32, #tpu.memory_space<smem>>
    %123 = vector.broadcast %122 : f32 to vector<4x1x256xf32>
    %124 = arith.mulf %121, %123 : vector<4x1x256xf32>
    %125 = vector.extract_strided_slice %0 {offsets = [0, 1, 0], sizes = [4, 1, 256], strides = [1, 1, 1]} : vector<4x3x256xf32> to vector<4x1x256xf32>
    %c1_63 = arith.constant 1 : index
    %c6_64 = arith.constant 6 : index
    %126 = memref.load %arg2[%c1_63, %c6_64] : memref<3x8xf32, #tpu.memory_space<smem>>
    %127 = vector.broadcast %126 : f32 to vector<4x1x256xf32>
    %128 = arith.mulf %125, %127 : vector<4x1x256xf32>
    %129 = arith.addf %124, %128 : vector<4x1x256xf32>
    %130 = vector.extract_strided_slice %0 {offsets = [0, 2, 0], sizes = [4, 1, 256], strides = [1, 1, 1]} : vector<4x3x256xf32> to vector<4x1x256xf32>
    %c2_65 = arith.constant 2 : index
    %c6_66 = arith.constant 6 : index
    %131 = memref.load %arg2[%c2_65, %c6_66] : memref<3x8xf32, #tpu.memory_space<smem>>
    %132 = vector.broadcast %131 : f32 to vector<4x1x256xf32>
    %133 = arith.mulf %130, %132 : vector<4x1x256xf32>
    %134 = arith.addf %129, %133 : vector<4x1x256xf32>
    %c6_67 = arith.constant 6 : index
    %135 = memref.load %arg3[%c6_67] : memref<8xf32, #tpu.memory_space<smem>>
    %136 = vector.broadcast %135 : f32 to vector<4x1x256xf32>
    %137 = arith.addf %134, %136 : vector<4x1x256xf32>
    %cst_68 = arith.constant 0.000000e+00 : f32
    %138 = vector.broadcast %cst_68 : f32 to vector<4x1x256xf32>
    %139 = arith.maximumf %137, %138 : vector<4x1x256xf32>
    %c0_69 = arith.constant 0 : index
    %c6_70 = arith.constant 6 : index
    %c0_71 = arith.constant 0 : index
    %140 = vector.load %arg4[%c0_69, %c6_70, %c0_71] : memref<4x8x256xf32, #tpu.memory_space<vmem>>, vector<4x1x256xf32>
    tpu.vector_store %arg4[%c0_69, %c6_70, %c0_71], %139 {strides = array<i32>} : memref<4x8x256xf32, #tpu.memory_space<vmem>>, vector<4x1x256xf32>,
    %141 = vector.extract_strided_slice %0 {offsets = [0, 0, 0], sizes = [4, 1, 256], strides = [1, 1, 1]} : vector<4x3x256xf32> to vector<4x1x256xf32>
    %c0_72 = arith.constant 0 : index
    %c7 = arith.constant 7 : index
    %142 = memref.load %arg2[%c0_72, %c7] : memref<3x8xf32, #tpu.memory_space<smem>>
    %143 = vector.broadcast %142 : f32 to vector<4x1x256xf32>
    %144 = arith.mulf %141, %143 : vector<4x1x256xf32>
    %145 = vector.extract_strided_slice %0 {offsets = [0, 1, 0], sizes = [4, 1, 256], strides = [1, 1, 1]} : vector<4x3x256xf32> to vector<4x1x256xf32>
    %c1_73 = arith.constant 1 : index
    %c7_74 = arith.constant 7 : index
    %146 = memref.load %arg2[%c1_73, %c7_74] : memref<3x8xf32, #tpu.memory_space<smem>>
    %147 = vector.broadcast %146 : f32 to vector<4x1x256xf32>
    %148 = arith.mulf %145, %147 : vector<4x1x256xf32>
    %149 = arith.addf %144, %148 : vector<4x1x256xf32>
    %150 = vector.extract_strided_slice %0 {offsets = [0, 2, 0], sizes = [4, 1, 256], strides = [1, 1, 1]} : vector<4x3x256xf32> to vector<4x1x256xf32>
    %c2_75 = arith.constant 2 : index
    %c7_76 = arith.constant 7 : index
    %151 = memref.load %arg2[%c2_75, %c7_76] : memref<3x8xf32, #tpu.memory_space<smem>>
    %152 = vector.broadcast %151 : f32 to vector<4x1x256xf32>
    %153 = arith.mulf %150, %152 : vector<4x1x256xf32>
    %154 = arith.addf %149, %153 : vector<4x1x256xf32>
    %c7_77 = arith.constant 7 : index
    %155 = memref.load %arg3[%c7_77] : memref<8xf32, #tpu.memory_space<smem>>
    %156 = vector.broadcast %155 : f32 to vector<4x1x256xf32>
    %157 = arith.addf %154, %156 : vector<4x1x256xf32>
    %cst_78 = arith.constant 0.000000e+00 : f32
    %158 = vector.broadcast %cst_78 : f32 to vector<4x1x256xf32>
    %159 = arith.maximumf %157, %158 : vector<4x1x256xf32>
    %c0_79 = arith.constant 0 : index
    %c7_80 = arith.constant 7 : index
    %c0_81 = arith.constant 0 : index
    %160 = vector.load %arg4[%c0_79, %c7_80, %c0_81] : memref<4x8x256xf32, #tpu.memory_space<vmem>>, vector<4x1x256xf32>
    tpu.vector_store %arg4[%c0_79, %c7_80, %c0_81], %159 {strides = array<i32>} : memref<4x8x256xf32, #tpu.memory_space<vmem>>, vector<4x1x256xf32>,
    return
  }
  func.func @transform_0(%arg0: i32) -> (i32, i32, i32) {
    %c0_i32 = arith.constant 0 : i32
    %c0_i32_0 = arith.constant 0 : i32
    %c0_i32_1 = arith.constant 0 : i32
    return %c0_i32, %c0_i32_0, %arg0 : i32, i32, i32
  }
  func.func @transform_1(%arg0: i32) -> (i32, i32) {
    %c0_i32 = arith.constant 0 : i32
    %c0_i32_0 = arith.constant 0 : i32
    %c0_i32_1 = arith.constant 0 : i32
    return %c0_i32, %c0_i32_0 : i32, i32
  }
  func.func @transform_2(%arg0: i32) -> i32 {
    %c0_i32 = arith.constant 0 : i32
    %c0_i32_0 = arith.constant 0 : i32
    return %c0_i32 : i32
  }
  func.func @transform_3(%arg0: i32) -> (i32, i32, i32) {
    %c0_i32 = arith.constant 0 : i32
    %c0_i32_0 = arith.constant 0 : i32
    %c0_i32_1 = arith.constant 0 : i32
    return %c0_i32, %c0_i32_0, %arg0 : i32, i32, i32
  }
}

</mosaic_0001>

<bundles_post_ra>
// kernel: tpu_custom_call.1
= control target key start
LH: loop header
LB: loop body
LE: loop exit
PB: predicated region body
PF: predicated region fallthrough
CT: control target
= control target key end

     0   :  { %8 = vsyncpa [#allocation4], 0  ;;  %s1783_s0 = inlined_call_operand.vmem [shape: f32[4,3,256], index: 0, kind: input, shape index: {}]   ;;  %s1784_s1 = inlined_call_operand.vmem [shape: f32[3,8], index: 1, kind: input, shape index: {}]   ;;  %s1785_s2 = inlined_call_operand.vmem [shape: f32[8], index: 2, kind: input, shape index: {}]   ;;  %s1786_s3 = inlined_call_operand.hbm [shape: f32[4,8,256], index: 3, kind: output, shape index: {}]  }
   0x1   :  { %9 = vsyncpa [#allocation6], 0 }
   0x2   :  { %10 = vsyncpa [#allocation3], 0  ;;  %s19_s14 = sshll.u32 %s1784_s1, 4  ;;  %s29_s17 = sshll.u32 %s1785_s2, 4  ;;  %s20_s14 = int_to_ptr.vmem [resolvable:$true] %s19_s14  ;;  %s30_s17 = int_to_ptr.vmem [resolvable:$true] %s29_s17 }
   0x3   :  { %s1317_s18 = scalar_lea.vmem %s20_s14, 64  ;;  %p1322_p1 = scmp.lt.s32.totalorder %s20_s14, %s20_s14 }
   0x4   :  { %p1318_p0 = scmp.ne.s32.totalorder %s20_s14, %s1317_s18  ;;  %p1323_p2 = scmp.lt.s32.totalorder %s1317_s18, %s1317_s18 }
   0x6   :  { %p1324_p3 = por %p1323_p2, %p1322_p1 }
   0x8   :  { %p1325_p4 = pnand %p1324_p3, %p1318_p0 }
   0xa   :  { %1328 = shalt.err (!%p1325_p4)
}
   0xb   :  { %s1369_s19 = smov [#allocation2]   ;;  %s1329_s20 = scalar_lea.vmem %s30_s17, 16 }
   0xc   :  { %22 = dma.vmem_to_smem %s20_s14, 64, %s1369_s19, [#allocation4]  }
   0xd   :  { %p1330_p5 = scmp.ne.s32.totalorder %s30_s17, %s1329_s20  ;;  %p1334_p6 = scmp.lt.s32.totalorder %s30_s17, %s30_s17 }
   0xe   :  { %p1335_p7 = scmp.lt.s32.totalorder %s1329_s20, %s1329_s20 }
  0x10   :  { %p1336_p8 = por %p1335_p7, %p1334_p6 }
  0x12   :  { %p1337_p9 = pnand %p1336_p8, %p1330_p5 }
  0x14   :  { %1340 = shalt.err (!%p1337_p9)
}
  0x15   :  { %s1370_s1 = smov [#allocation5]  }
  0x16   :  { %32 = dma.vmem_to_smem %s30_s17, 16, %s1370_s1, [#allocation6]  }
  0x17   :  { %1363 = dma.done.wait [#allocation4], 64  }
  0x18   :  { %1364 = vsyncadd [#allocation4], 4294967232 }
  0x19   :  { %1365 = dma.done.wait [#allocation6], 16  }
  0x1a   :  { %1366 = vsyncadd [#allocation6], 4294967280 }
  0x1b   :  { %39 = sfence }
  0x1c   :  { %s44_s2 = sld [smem:[#allocation2]]  ;;  %v119_v0 = vlaneseq  ;;  %v1371_v1 = vmov 1966171168   ;;  %v1404_v4 = vld [vmem:[%s1783_s0] sm:$0x77]  ;;  %s1406_s26 = sld [smem:[#allocation2 + $0x1]] }
  0x1d   :  { %s1217_s21 = sld [smem:[#allocation2 + $0x80]]  ;;  %v117_v2 = vunpack.c.l.s4 %v1371_v1  ;;  %s1408_s27 = sld [smem:[#allocation2 + $0x81]]  ;;  %v1413_v6 = vld [vmem:[%s1783_s0 + $0x8] sm:$0x77]  ;;  %v1420_v10 = vld [vmem:[%s1783_s0 + $0x10] sm:$0x77] }
  0x1e   :  { %s1222_s22 = sld [smem:[#allocation2 + $0x100]]  ;;  %v120_v3 = vshrl.u32 %v119_v0, 7  ;;  %s1422_s5 = sld [smem:[#allocation2 + $0x101]]  ;;  %v1433_v19 = vld [vmem:[%s1783_s0 + $0x18] sm:$0x77]  ;;  %vm1442_vm0 = vcmp.lt.s32.totalorder %v119_v0, 256 }
  0x1f   :  { %s102_s23 = sld [smem:[#allocation5]]  ;;  %v118_v5 = vunpack.c.0.s8 %v117_v2  ;;  %s1435_s8 = sld [smem:[#allocation5 + $0x1]] }
  0x20   :  { %s1457_s0 = sld [smem:[#allocation2 + $0x2]]  ;;  %s1504_s12 = sld [smem:[#allocation2 + $0x3]] }
  0x21   :  { %v1415_v9 = vsub.s32 %v118_v5, %v120_v3  ;;  %s1463_s9 = sld [smem:[#allocation2 + $0x82]]  ;;  %s1506_s13 = sld [smem:[#allocation2 + $0x83]] }
  0x22   :  { %v45_v7 = vstv %s44_s2  ;;  %v192_v35 = vstv %s1406_s26  ;;  %s1465_s10 = sld [smem:[#allocation2 + $0x102]]  ;;  %s1516_s14 = sld [smem:[#allocation2 + $0x103]] }
  0x23   :  { %v51_v8 = vstv %s1217_s21  ;;  %v46_v11 = vmul.f32 %v45_v7, %v1404_v4  ;;  %v47_v16 = vmul.f32 %v45_v7, %v1413_v6  ;;  %v48_v21 = vmul.f32 %v45_v7, %v1420_v10  ;;  %s1471_s11 = sld [smem:[#allocation5 + $0x2]]  ;;  %s1518_s15 = sld [smem:[#allocation5 + $0x3]] }
  0x24   :  { %v52_v12 = vmul.f32 %v51_v8, %v1404_v4  ;;  %v77_v13 = vstv %s1222_s22  ;;  %v53_v17 = vmul.f32 %v51_v8, %v1413_v6  ;;  %v54_v22 = vmul.f32 %v51_v8, %v1420_v10  ;;  %s1548_s16 = sld [smem:[#allocation2 + $0x4]]  ;;  %s1596_s20 = sld [smem:[#allocation2 + $0x5]] }
  0x25   :  { %v103_v14 = vstv %s102_s23  ;;  %v78_v15 = vmul.f32 %v77_v13, %v1404_v4  ;;  %v79_v18 = vmul.f32 %v77_v13, %v1413_v6  ;;  %v80_v23 = vmul.f32 %v77_v13, %v1420_v10  ;;  %s1555_s17 = sld [smem:[#allocation2 + $0x84]]  ;;  %s1598_s1 = sld [smem:[#allocation2 + $0x85]] }
  0x26   :  { %v1218_v20 = vrot.slane %v52_v12, 9  ;;  %v1219_v25 = vrot.slane %v53_v17, 9  ;;  %v49_v27 = vmul.f32 %v45_v7, %v1433_v19  ;;  %v1220_v29 = vrot.slane %v54_v22, 9  ;;  %s1557_s18 = sld [smem:[#allocation2 + $0x104]]  ;;  %s1609_s2 = sld [smem:[#allocation2 + $0x105]] }
  0x27   :  { %v1223_v24 = vrot.slane %v78_v15, 10  ;;  %v1224_v26 = vrot.slane %v79_v18, 10  ;;  %v1225_v30 = vrot.slane %v80_v23, 10  ;;  %v55_v31 = vmul.f32 %v51_v8, %v1433_v19  ;;  %s1566_s19 = sld [smem:[#allocation5 + $0x4]]  ;;  %s1611_s21 = sld [smem:[#allocation5 + $0x5]] }
  0x28   :  { %v72_v28 = vadd.f32 %v1218_v20, %v46_v11  ;;  %v73_v33 = vadd.f32 %v1219_v25, %v47_v16  ;;  %v81_v34 = vmul.f32 %v77_v13, %v1433_v19  ;;  %v198_v36 = vstv %s1408_s27  ;;  %s1640_s22 = sld [smem:[#allocation2 + $0x6]]  ;;  %s1688_s26 = sld [smem:[#allocation2 + $0x7]] }
  0x29   :  { %v74_v38 = vadd.f32 %v1220_v29, %v48_v21  ;;  %v1221_v39 = vrot.slane %v55_v31, 9  ;;  %v193_v40 = vmul.f32 %v192_v35, %v1404_v4  ;;  %v199_v43 = vmul.f32 %v198_v36, %v1404_v4  ;;  %s1647_s23 = sld [smem:[#allocation2 + $0x86]]  ;;  %s1690_s27 = sld [smem:[#allocation2 + $0x87]] }
  0x2a   :  { %v98_v37 = vadd.f32 %v1223_v24, %v72_v28  ;;  %v99_v41 = vadd.f32 %v1224_v26, %v73_v33  ;;  %v1226_v42 = vrot.slane %v81_v34, 10  ;;  %v224_v44 = vstv %s1422_s5  ;;  %s1649_s24 = sld [smem:[#allocation2 + $0x106]]  ;;  %s1701_s28 = sld [smem:[#allocation2 + $0x107]] }
  0x2b   :  { %v100_v46 = vadd.f32 %v1225_v30, %v74_v38  ;;  %v75_v47 = vadd.f32 %v1221_v39, %v49_v27  ;;  %v225_v48 = vmul.f32 %v224_v44, %v1404_v4  ;;  %v1229_v50 = vrot.slane %v199_v43, 9  ;;  %s1658_s25 = sld [smem:[#allocation5 + $0x6]]  ;;  %s1703_s29 = sld [smem:[#allocation5 + $0x7]] }
  0x2c   :  { %v104_v45 = vadd.f32 %v103_v14, %v98_v37  ;;  %v105_v49 = vadd.f32 %v103_v14, %v99_v41  ;;  %v1454_v51 = vstv %s1435_s8  ;;  %v194_v52 = vmul.f32 %v192_v35, %v1413_v6  ;;  %s1372_s30 = smov [#allocation7]  }
  0x2d   :  { %v106_v54 = vadd.f32 %v103_v14, %v100_v46  ;;  %v101_v55 = vadd.f32 %v1226_v42, %v75_v47  ;;  %v1234_v56 = vrot.slane %v225_v48, 10  ;;  %v219_v58 = vadd.f32 %v1229_v50, %v193_v40  ;;  %s1204_s4 = sshll.u32 %s1372_s30, 4  ;;  %s1205_s4 = int_to_ptr.vmem [resolvable:$true] %s1204_s4 }
  0x2e   :  { %v108_v53 = vmax.f32 %v104_v45, 0.0  ;;  %v109_v57 = vmax.f32 %v105_v49, 0.0  ;;  %v200_v59 = vmul.f32 %v198_v36, %v1413_v6  ;;  %v226_v60 = vmul.f32 %v224_v44, %v1413_v6  ;;  %s1341_s5 = scalar_lea.vmem %s1205_s4, 1024  ;;  %p1346_p11 = scmp.lt.s32.totalorder %s1205_s4, %s1205_s4 }
  0x2f   :  { %v110_v62 = vmax.f32 %v106_v54, 0.0  ;;  %v107_v63 = vadd.f32 %v103_v14, %v101_v55  ;;  %v195_v0 = vmul.f32 %v192_v35, %v1420_v10  ;;  %v245_v2 = vadd.f32 %v1234_v56, %v219_v58  ;;  %p1342_p10 = scmp.ne.s32.totalorder %s1205_s4, %s1341_s5  ;;  %p1347_p12 = scmp.lt.s32.totalorder %s1341_s5, %s1341_s5 }
  0x30   :  { %v122_v61 = vrot.slane %v108_v53, %v1415_v9  ;;  %v136_v1 = vrot.slane %v109_v57, %v1415_v9  ;;  %v1230_v3 = vrot.slane %v200_v59, 9  ;;  %v1235_v5 = vrot.slane %v226_v60, 10 }
  0x31   :  { %v150_v8 = vrot.slane %v110_v62, %v1415_v9  ;;  %v111_v11 = vmax.f32 %v107_v63, 0.0  ;;  %v201_v12 = vmul.f32 %v198_v36, %v1420_v10  ;;  %v251_v14 = vadd.f32 %v1454_v51, %v245_v2  ;;  %p1348_p13 = por %p1347_p12, %p1346_p11 }
  0x32   :  { %v129_v7 = vrot.slane %v122_v61, %v1415_v9  ;;  %v143_v13 = vrot.slane %v136_v1, %v1415_v9  ;;  %v220_v15 = vadd.f32 %v1230_v3, %v194_v52  ;;  %v227_v16 = vmul.f32 %v224_v44, %v1420_v10 }
  0x33   :  { %v157_v17 = vrot.slane %v150_v8, %v1415_v9  ;;  %v164_v18 = vrot.slane %v111_v11, %v1415_v9  ;;  %v1231_v20 = vrot.slane %v201_v12, 9  ;;  %v196_v21 = vmul.f32 %v192_v35, %v1433_v19  ;;  %p1349_p0 = pnand %p1348_p13, %p1342_p10 }
  0x34   :  { %180 = vst.msk [vmem:[#allocation7] ss:$8 sm:$0x3] %vm1442_vm0, %v129_v7  ;;  %183 = vst.msk [vmem:[#allocation7 + $0x10] ss:$8 sm:$0x3] %vm1442_vm0, %v143_v13  ;;  %v246_v23 = vadd.f32 %v1235_v5, %v220_v15  ;;  %v202_v25 = vmul.f32 %v198_v36, %v1433_v19  ;;  %v228_v28 = vmul.f32 %v224_v44, %v1433_v19  ;;  %v336_v29 = vstv %s1457_s0 }
  0x35   :  { %v255_v22 = vmax.f32 %v251_v14, 0.0  ;;  %v1236_v24 = vrot.slane %v227_v16, 10  ;;  %186 = vst.msk [vmem:[#allocation7 + $0x20] ss:$8 sm:$0x3] %vm1442_vm0, %v157_v17  ;;  %v171_v26 = vrot.slane %v164_v18, %v1415_v9  ;;  %v221_v27 = vadd.f32 %v1231_v20, %v195_v0 }
  0x36   :  { %v252_v31 = vadd.f32 %v1454_v51, %v246_v23  ;;  %v1232_v33 = vrot.slane %v202_v25, 9  ;;  %v337_v34 = vmul.f32 %v336_v29, %v1404_v4  ;;  %v1237_v36 = vrot.slane %v228_v28, 10 }
  0x37   :  { %v269_v30 = vrot.slane %v255_v22, %v1415_v9  ;;  %189 = vst.msk [vmem:[#allocation7 + $0x30] ss:$8 sm:$0x3] %vm1442_vm0, %v171_v26  ;;  %v247_v35 = vadd.f32 %v1236_v24, %v221_v27  ;;  %v342_v37 = vstv %s1463_s9  ;;  %v368_v38 = vstv %s1465_s10 }
  0x38   :  { %v256_v40 = vmax.f32 %v252_v31, 0.0  ;;  %v222_v41 = vadd.f32 %v1232_v33, %v196_v21  ;;  %v343_v42 = vmul.f32 %v342_v37, %v1404_v4  ;;  %v369_v44 = vmul.f32 %v368_v38, %v1404_v4 }
  0x39   :  { %v276_v39 = vrot.slane %v269_v30, %v1415_v9  ;;  %v253_v43 = vadd.f32 %v1454_v51, %v247_v35  ;;  %v1501_v45 = vstv %s1471_s11  ;;  %v338_v46 = vmul.f32 %v336_v29, %v1413_v6 }
  0x3a   :  { %v283_v47 = vrot.slane %v256_v40, %v1415_v9  ;;  %v248_v48 = vadd.f32 %v1237_v36, %v222_v41  ;;  %v1241_v49 = vrot.slane %v343_v42, 9  ;;  %v344_v50 = vmul.f32 %v342_v37, %v1413_v6 }
  0x3b   :  { %324 = vst.msk [vmem:[#allocation7 + $0x1] ss:$8 sm:$0x3] %vm1442_vm0, %v276_v39  ;;  %v257_v52 = vmax.f32 %v253_v43, 0.0  ;;  %v1246_v53 = vrot.slane %v369_v44, 10  ;;  %v370_v54 = vmul.f32 %v368_v38, %v1413_v6  ;;  %v339_v55 = vmul.f32 %v336_v29, %v1420_v10 }
  0x3c   :  { %v290_v56 = vrot.slane %v283_v47, %v1415_v9  ;;  %v254_v57 = vadd.f32 %v1454_v51, %v248_v48  ;;  %v363_v58 = vadd.f32 %v1241_v49, %v337_v34  ;;  %v1242_v59 = vrot.slane %v344_v50, 9 }
  0x3d   :  { %v297_v60 = vrot.slane %v257_v52, %v1415_v9  ;;  %v1247_v61 = vrot.slane %v370_v54, 10  ;;  %v345_v62 = vmul.f32 %v342_v37, %v1420_v10  ;;  %v371_v63 = vmul.f32 %v368_v38, %v1420_v10 }
  0x3e   :  { %327 = vst.msk [vmem:[#allocation7 + $0x11] ss:$8 sm:$0x3] %vm1442_vm0, %v290_v56  ;;  %v258_v0 = vmax.f32 %v254_v57, 0.0  ;;  %v389_v51 = vadd.f32 %v1246_v53, %v363_v58  ;;  %v364_v1 = vadd.f32 %v1242_v59, %v338_v46  ;;  %v340_v2 = vmul.f32 %v336_v29, %v1433_v19 }
  0x3f   :  { %v304_v3 = vrot.slane %v297_v60, %v1415_v9  ;;  %v1243_v5 = vrot.slane %v345_v62, 9  ;;  %v1248_v7 = vrot.slane %v371_v63, 10  ;;  %v346_v8 = vmul.f32 %v342_v37, %v1433_v19 }
  0x40   :  { %v311_v11 = vrot.slane %v258_v0, %v1415_v9  ;;  %v395_v12 = vadd.f32 %v1501_v45, %v389_v51  ;;  %v390_v13 = vadd.f32 %v1247_v61, %v364_v1  ;;  %v372_v14 = vmul.f32 %v368_v38, %v1433_v19 }
  0x41   :  { %330 = vst.msk [vmem:[#allocation7 + $0x21] ss:$8 sm:$0x3] %vm1442_vm0, %v304_v3  ;;  %v365_v15 = vadd.f32 %v1243_v5, %v339_v55  ;;  %v1244_v16 = vrot.slane %v346_v8, 9  ;;  %v480_v17 = vstv %s1504_s12  ;;  %v486_v18 = vstv %s1506_s13 }
  0x42   :  { %v318_v20 = vrot.slane %v311_v11, %v1415_v9  ;;  %v399_v21 = vmax.f32 %v395_v12, 0.0  ;;  %v396_v22 = vadd.f32 %v1501_v45, %v390_v13  ;;  %v1249_v23 = vrot.slane %v372_v14, 10 }
  0x43   :  { %v391_v24 = vadd.f32 %v1248_v7, %v365_v15  ;;  %v366_v25 = vadd.f32 %v1244_v16, %v340_v2  ;;  %v481_v26 = vmul.f32 %v480_v17, %v1404_v4  ;;  %v487_v27 = vmul.f32 %v486_v18, %v1404_v4 }
  0x44   :  { %333 = vst.msk [vmem:[#allocation7 + $0x31] ss:$8 sm:$0x3] %vm1442_vm0, %v318_v20  ;;  %v413_v28 = vrot.slane %v399_v21, %v1415_v9  ;;  %v400_v29 = vmax.f32 %v396_v22, 0.0  ;;  %v512_v30 = vstv %s1516_s14  ;;  %v1544_v31 = vstv %s1518_s15 }
  0x45   :  { %v397_v33 = vadd.f32 %v1501_v45, %v391_v24  ;;  %v392_v34 = vadd.f32 %v1249_v23, %v366_v25  ;;  %v1253_v35 = vrot.slane %v487_v27, 9  ;;  %v513_v36 = vmul.f32 %v512_v30, %v1404_v4 }
  0x46   :  { %v420_v37 = vrot.slane %v413_v28, %v1415_v9  ;;  %v427_v38 = vrot.slane %v400_v29, %v1415_v9  ;;  %v482_v39 = vmul.f32 %v480_v17, %v1413_v6  ;;  %v488_v40 = vmul.f32 %v486_v18, %v1413_v6 }
  0x47   :  { %v401_v41 = vmax.f32 %v397_v33, 0.0  ;;  %v398_v42 = vadd.f32 %v1501_v45, %v392_v34  ;;  %v507_v43 = vadd.f32 %v1253_v35, %v481_v26  ;;  %v1258_v44 = vrot.slane %v513_v36, 10 }
  0x48   :  { %468 = vst.msk [vmem:[#allocation7 + $0x2] ss:$8 sm:$0x3] %vm1442_vm0, %v420_v37  ;;  %v434_v46 = vrot.slane %v427_v38, %v1415_v9  ;;  %v1254_v47 = vrot.slane %v488_v40, 9  ;;  %v514_v48 = vmul.f32 %v512_v30, %v1413_v6  ;;  %v483_v49 = vmul.f32 %v480_v17, %v1420_v10 }
  0x49   :  { %v441_v50 = vrot.slane %v401_v41, %v1415_v9  ;;  %v402_v52 = vmax.f32 %v398_v42, 0.0  ;;  %v533_v45 = vadd.f32 %v1258_v44, %v507_v43  ;;  %v489_v53 = vmul.f32 %v486_v18, %v1420_v10 }
  0x4a   :  { %471 = vst.msk [vmem:[#allocation7 + $0x12] ss:$8 sm:$0x3] %vm1442_vm0, %v434_v46  ;;  %v508_v54 = vadd.f32 %v1254_v47, %v482_v39  ;;  %v1259_v55 = vrot.slane %v514_v48, 10  ;;  %v515_v56 = vmul.f32 %v512_v30, %v1420_v10  ;;  %v484_v57 = vmul.f32 %v480_v17, %v1433_v19 }
  0x4b   :  { %v448_v58 = vrot.slane %v441_v50, %v1415_v9  ;;  %v455_v59 = vrot.slane %v402_v52, %v1415_v9  ;;  %v539_v60 = vadd.f32 %v1544_v31, %v533_v45  ;;  %v1255_v61 = vrot.slane %v489_v53, 9 }
  0x4c   :  { %v534_v62 = vadd.f32 %v1259_v55, %v508_v54  ;;  %v1260_v63 = vrot.slane %v515_v56, 10  ;;  %v490_v0 = vmul.f32 %v486_v18, %v1433_v19  ;;  %v516_v51 = vmul.f32 %v512_v30, %v1433_v19 }
  0x4d   :  { %474 = vst.msk [vmem:[#allocation7 + $0x22] ss:$8 sm:$0x3] %vm1442_vm0, %v448_v58  ;;  %v462_v1 = vrot.slane %v455_v59, %v1415_v9  ;;  %v543_v2 = vmax.f32 %v539_v60, 0.0  ;;  %v509_v3 = vadd.f32 %v1255_v61, %v483_v49  ;;  %v624_v5 = vstv %s1548_s16 }
  0x4e   :  { %v540_v7 = vadd.f32 %v1544_v31, %v534_v62  ;;  %v1256_v8 = vrot.slane %v490_v0, 9  ;;  %v1261_v11 = vrot.slane %v516_v51, 10  ;;  %v625_v12 = vmul.f32 %v624_v5, %v1404_v4 }
  0x4f   :  { %477 = vst.msk [vmem:[#allocation7 + $0x32] ss:$8 sm:$0x3] %vm1442_vm0, %v462_v1  ;;  %v557_v13 = vrot.slane %v543_v2, %v1415_v9  ;;  %v535_v14 = vadd.f32 %v1260_v63, %v509_v3  ;;  %v630_v15 = vstv %s1555_s17  ;;  %v656_v16 = vstv %s1557_s18 }
  0x50   :  { %v544_v17 = vmax.f32 %v540_v7, 0.0  ;;  %v510_v18 = vadd.f32 %v1256_v8, %v484_v57  ;;  %v631_v20 = vmul.f32 %v630_v15, %v1404_v4  ;;  %v657_v21 = vmul.f32 %v656_v16, %v1404_v4 }
  0x51   :  { %v564_v22 = vrot.slane %v557_v13, %v1415_v9  ;;  %v541_v23 = vadd.f32 %v1544_v31, %v535_v14  ;;  %v1593_v24 = vstv %s1566_s19  ;;  %v626_v25 = vmul.f32 %v624_v5, %v1413_v6 }
  0x52   :  { %v571_v26 = vrot.slane %v544_v17, %v1415_v9  ;;  %v536_v27 = vadd.f32 %v1261_v11, %v510_v18  ;;  %v1265_v28 = vrot.slane %v631_v20, 9  ;;  %v1270_v29 = vrot.slane %v657_v21, 10 }
  0x53   :  { %612 = vst.msk [vmem:[#allocation7 + $0x3] ss:$8 sm:$0x3] %vm1442_vm0, %v564_v22  ;;  %v545_v30 = vmax.f32 %v541_v23, 0.0  ;;  %v632_v33 = vmul.f32 %v630_v15, %v1413_v6  ;;  %v658_v34 = vmul.f32 %v656_v16, %v1413_v6  ;;  %v627_v35 = vmul.f32 %v624_v5, %v1420_v10 }
  0x54   :  { %v578_v36 = vrot.slane %v571_v26, %v1415_v9  ;;  %v542_v37 = vadd.f32 %v1544_v31, %v536_v27  ;;  %v651_v38 = vadd.f32 %v1265_v28, %v625_v12  ;;  %v633_v39 = vmul.f32 %v630_v15, %v1420_v10 }
  0x55   :  { %v585_v40 = vrot.slane %v545_v30, %v1415_v9  ;;  %v1266_v41 = vrot.slane %v632_v33, 9  ;;  %v1271_v42 = vrot.slane %v658_v34, 10  ;;  %v659_v43 = vmul.f32 %v656_v16, %v1420_v10 }
  0x56   :  { %615 = vst.msk [vmem:[#allocation7 + $0x13] ss:$8 sm:$0x3] %vm1442_vm0, %v578_v36  ;;  %v546_v44 = vmax.f32 %v542_v37, 0.0  ;;  %v677_v31 = vadd.f32 %v1270_v29, %v651_v38  ;;  %v1267_v46 = vrot.slane %v633_v39, 9  ;;  %v628_v47 = vmul.f32 %v624_v5, %v1433_v19 }
  0x57   :  { %v592_v48 = vrot.slane %v585_v40, %v1415_v9  ;;  %v652_v49 = vadd.f32 %v1266_v41, %v626_v25  ;;  %v1272_v50 = vrot.slane %v659_v43, 10  ;;  %v634_v52 = vmul.f32 %v630_v15, %v1433_v19 }
  0x58   :  { %v599_v45 = vrot.slane %v546_v44, %v1415_v9  ;;  %v683_v53 = vadd.f32 %v1593_v24, %v677_v31  ;;  %v653_v54 = vadd.f32 %v1267_v46, %v627_v35  ;;  %v660_v55 = vmul.f32 %v656_v16, %v1433_v19 }
  0x59   :  { %618 = vst.msk [vmem:[#allocation7 + $0x23] ss:$8 sm:$0x3] %vm1442_vm0, %v592_v48  ;;  %v678_v56 = vadd.f32 %v1271_v42, %v652_v49  ;;  %v1268_v57 = vrot.slane %v634_v52, 9  ;;  %v768_v58 = vstv %s1596_s20  ;;  %v774_v59 = vstv %s1598_s1 }
  0x5a   :  { %v606_v60 = vrot.slane %v599_v45, %v1415_v9  ;;  %v687_v61 = vmax.f32 %v683_v53, 0.0  ;;  %v679_v62 = vadd.f32 %v1272_v50, %v653_v54  ;;  %v1273_v63 = vrot.slane %v660_v55, 10 }
  0x5b   :  { %v684_v0 = vadd.f32 %v1593_v24, %v678_v56  ;;  %v654_v51 = vadd.f32 %v1268_v57, %v628_v47  ;;  %v769_v1 = vmul.f32 %v768_v58, %v1404_v4  ;;  %v775_v2 = vmul.f32 %v774_v59, %v1404_v4 }
  0x5c   :  { %621 = vst.msk [vmem:[#allocation7 + $0x33] ss:$8 sm:$0x3] %vm1442_vm0, %v606_v60  ;;  %v701_v3 = vrot.slane %v687_v61, %v1415_v9  ;;  %v685_v5 = vadd.f32 %v1593_v24, %v679_v62  ;;  %v800_v7 = vstv %s1609_s2  ;;  %v1637_v8 = vstv %s1611_s21 }
  0x5d   :  { %v688_v11 = vmax.f32 %v684_v0, 0.0  ;;  %v680_v12 = vadd.f32 %v1273_v63, %v654_v51  ;;  %v1277_v13 = vrot.slane %v775_v2, 9  ;;  %v801_v14 = vmul.f32 %v800_v7, %v1404_v4 }
  0x5e   :  { %v708_v15 = vrot.slane %v701_v3, %v1415_v9  ;;  %v689_v16 = vmax.f32 %v685_v5, 0.0  ;;  %v770_v17 = vmul.f32 %v768_v58, %v1413_v6  ;;  %v776_v18 = vmul.f32 %v774_v59, %v1413_v6 }
  0x5f   :  { %v715_v20 = vrot.slane %v688_v11, %v1415_v9  ;;  %v686_v21 = vadd.f32 %v1593_v24, %v680_v12  ;;  %v795_v22 = vadd.f32 %v1277_v13, %v769_v1  ;;  %v1282_v23 = vrot.slane %v801_v14, 10 }
  0x60   :  { %756 = vst.msk [vmem:[#allocation7 + $0x4] ss:$8 sm:$0x3] %vm1442_vm0, %v708_v15  ;;  %v729_v25 = vrot.slane %v689_v16, %v1415_v9  ;;  %v1278_v26 = vrot.slane %v776_v18, 9  ;;  %v802_v27 = vmul.f32 %v800_v7, %v1413_v6  ;;  %v771_v28 = vmul.f32 %v768_v58, %v1420_v10 }
  0x61   :  { %v722_v29 = vrot.slane %v715_v20, %v1415_v9  ;;  %v690_v30 = vmax.f32 %v686_v21, 0.0  ;;  %v821_v24 = vadd.f32 %v1282_v23, %v795_v22  ;;  %v777_v33 = vmul.f32 %v774_v59, %v1420_v10 }
  0x62   :  { %v736_v34 = vrot.slane %v729_v25, %v1415_v9  ;;  %v796_v35 = vadd.f32 %v1278_v26, %v770_v17  ;;  %v1283_v36 = vrot.slane %v802_v27, 10  ;;  %v803_v37 = vmul.f32 %v800_v7, %v1420_v10 }
  0x63   :  { %759 = vst.msk [vmem:[#allocation7 + $0x14] ss:$8 sm:$0x3] %vm1442_vm0, %v722_v29  ;;  %v743_v38 = vrot.slane %v690_v30, %v1415_v9  ;;  %v827_v39 = vadd.f32 %v1637_v8, %v821_v24  ;;  %v1279_v40 = vrot.slane %v777_v33, 9  ;;  %v772_v41 = vmul.f32 %v768_v58, %v1433_v19 }
  0x64   :  { %762 = vst.msk [vmem:[#allocation7 + $0x24] ss:$8 sm:$0x3] %vm1442_vm0, %v736_v34  ;;  %v822_v42 = vadd.f32 %v1283_v36, %v796_v35  ;;  %v1284_v43 = vrot.slane %v803_v37, 10  ;;  %v778_v44 = vmul.f32 %v774_v59, %v1433_v19  ;;  %v804_v31 = vmul.f32 %v800_v7, %v1433_v19 }
  0x65   :  { %v750_v46 = vrot.slane %v743_v38, %v1415_v9  ;;  %v831_v47 = vmax.f32 %v827_v39, 0.0  ;;  %v797_v48 = vadd.f32 %v1279_v40, %v771_v28  ;;  %v912_v49 = vstv %s1640_s22 }
  0x66   :  { %v828_v50 = vadd.f32 %v1637_v8, %v822_v42  ;;  %v1280_v52 = vrot.slane %v778_v44, 9  ;;  %v1285_v45 = vrot.slane %v804_v31, 10  ;;  %v913_v53 = vmul.f32 %v912_v49, %v1404_v4 }
  0x67   :  { %765 = vst.msk [vmem:[#allocation7 + $0x34] ss:$8 sm:$0x3] %vm1442_vm0, %v750_v46  ;;  %v845_v54 = vrot.slane %v831_v47, %v1415_v9  ;;  %v823_v55 = vadd.f32 %v1284_v43, %v797_v48  ;;  %v918_v56 = vstv %s1647_s23  ;;  %v944_v57 = vstv %s1649_s24 }
  0x68   :  { %v832_v58 = vmax.f32 %v828_v50, 0.0  ;;  %v798_v59 = vadd.f32 %v1280_v52, %v772_v41  ;;  %v919_v60 = vmul.f32 %v918_v56, %v1404_v4  ;;  %v945_v61 = vmul.f32 %v944_v57, %v1404_v4 }
  0x69   :  { %v852_v62 = vrot.slane %v845_v54, %v1415_v9  ;;  %v829_v63 = vadd.f32 %v1637_v8, %v823_v55  ;;  %v1685_v0 = vstv %s1658_s25  ;;  %v914_v51 = vmul.f32 %v912_v49, %v1413_v6 }
  0x6a   :  { %v859_v1 = vrot.slane %v832_v58, %v1415_v9  ;;  %v824_v2 = vadd.f32 %v1285_v45, %v798_v59  ;;  %v1289_v3 = vrot.slane %v919_v60, 9  ;;  %v1294_v5 = vrot.slane %v945_v61, 10 }
  0x6b   :  { %900 = vst.msk [vmem:[#allocation7 + $0x5] ss:$8 sm:$0x3] %vm1442_vm0, %v852_v62  ;;  %v833_v7 = vmax.f32 %v829_v63, 0.0  ;;  %v920_v11 = vmul.f32 %v918_v56, %v1413_v6  ;;  %v946_v12 = vmul.f32 %v944_v57, %v1413_v6  ;;  %v915_v13 = vmul.f32 %v912_v49, %v1420_v10 }
  0x6c   :  { %v866_v14 = vrot.slane %v859_v1, %v1415_v9  ;;  %v830_v15 = vadd.f32 %v1637_v8, %v824_v2  ;;  %v939_v16 = vadd.f32 %v1289_v3, %v913_v53  ;;  %v921_v17 = vmul.f32 %v918_v56, %v1420_v10 }
  0x6d   :  { %v873_v18 = vrot.slane %v833_v7, %v1415_v9  ;;  %v1290_v20 = vrot.slane %v920_v11, 9  ;;  %v1295_v21 = vrot.slane %v946_v12, 10  ;;  %v947_v22 = vmul.f32 %v944_v57, %v1420_v10 }
  0x6e   :  { %903 = vst.msk [vmem:[#allocation7 + $0x15] ss:$8 sm:$0x3] %vm1442_vm0, %v866_v14  ;;  %v834_v23 = vmax.f32 %v830_v15, 0.0  ;;  %v965_v8 = vadd.f32 %v1294_v5, %v939_v16  ;;  %v1291_v25 = vrot.slane %v921_v17, 9  ;;  %v916_v26 = vmul.f32 %v912_v49, %v1433_v19 }
  0x6f   :  { %v880_v27 = vrot.slane %v873_v18, %v1415_v9  ;;  %v940_v28 = vadd.f32 %v1290_v20, %v914_v51  ;;  %v1296_v29 = vrot.slane %v947_v22, 10  ;;  %v922_v30 = vmul.f32 %v918_v56, %v1433_v19 }
  0x70   :  { %v887_v24 = vrot.slane %v834_v23, %v1415_v9  ;;  %v971_v33 = vadd.f32 %v1685_v0, %v965_v8  ;;  %v941_v34 = vadd.f32 %v1291_v25, %v915_v13  ;;  %v948_v35 = vmul.f32 %v944_v57, %v1433_v19 }
  0x71   :  { %906 = vst.msk [vmem:[#allocation7 + $0x25] ss:$8 sm:$0x3] %vm1442_vm0, %v880_v27  ;;  %v966_v36 = vadd.f32 %v1295_v21, %v940_v28  ;;  %v1292_v37 = vrot.slane %v922_v30, 9  ;;  %v1056_v38 = vstv %s1688_s26  ;;  %v1062_v39 = vstv %s1690_s27 }
  0x72   :  { %v894_v40 = vrot.slane %v887_v24, %v1415_v9  ;;  %v975_v41 = vmax.f32 %v971_v33, 0.0  ;;  %v967_v42 = vadd.f32 %v1296_v29, %v941_v34  ;;  %v1297_v43 = vrot.slane %v948_v35, 10 }
  0x73   :  { %v972_v44 = vadd.f32 %v1685_v0, %v966_v36  ;;  %v942_v31 = vadd.f32 %v1292_v37, %v916_v26  ;;  %v1057_v46 = vmul.f32 %v1056_v38, %v1404_v4  ;;  %v1063_v47 = vmul.f32 %v1062_v39, %v1404_v4 }
  0x74   :  { %909 = vst.msk [vmem:[#allocation7 + $0x35] ss:$8 sm:$0x3] %vm1442_vm0, %v894_v40  ;;  %v989_v48 = vrot.slane %v975_v41, %v1415_v9  ;;  %v973_v49 = vadd.f32 %v1685_v0, %v967_v42  ;;  %v1088_v50 = vstv %s1701_s28  ;;  %v1114_v52 = vstv %s1703_s29 }
  0x75   :  { %v976_v45 = vmax.f32 %v972_v44, 0.0  ;;  %v968_v53 = vadd.f32 %v1297_v43, %v942_v31  ;;  %v1301_v54 = vrot.slane %v1063_v47, 9  ;;  %v1089_v55 = vmul.f32 %v1088_v50, %v1404_v4 }
  0x76   :  { %v996_v56 = vrot.slane %v989_v48, %v1415_v9  ;;  %v977_v57 = vmax.f32 %v973_v49, 0.0  ;;  %v1058_v58 = vmul.f32 %v1056_v38, %v1413_v6  ;;  %v1064_v59 = vmul.f32 %v1062_v39, %v1413_v6 }
  0x77   :  { %v1003_v60 = vrot.slane %v976_v45, %v1415_v9  ;;  %v974_v61 = vadd.f32 %v1685_v0, %v968_v53  ;;  %v1083_v62 = vadd.f32 %v1301_v54, %v1057_v46  ;;  %v1306_v63 = vrot.slane %v1089_v55, 10 }
  0x78   :  { %1044 = vst.msk [vmem:[#allocation7 + $0x6] ss:$8 sm:$0x3] %vm1442_vm0, %v996_v56  ;;  %v1017_v51 = vrot.slane %v977_v57, %v1415_v9  ;;  %v1302_v1 = vrot.slane %v1064_v59, 9  ;;  %v1090_v4 = vmul.f32 %v1088_v50, %v1413_v6  ;;  %v1059_v2 = vmul.f32 %v1056_v38, %v1420_v10 }
  0x79   :  { %v1010_v3 = vrot.slane %v1003_v60, %v1415_v9  ;;  %v978_v5 = vmax.f32 %v974_v61, 0.0  ;;  %v1109_v7 = vadd.f32 %v1306_v63, %v1083_v62  ;;  %v1065_v11 = vmul.f32 %v1062_v39, %v1420_v10 }
  0x7a   :  { %v1024_v0 = vrot.slane %v1017_v51, %v1415_v9  ;;  %v1084_v12 = vadd.f32 %v1302_v1, %v1058_v58  ;;  %v1307_v13 = vrot.slane %v1090_v4, 10  ;;  %v1091_v14 = vmul.f32 %v1088_v50, %v1420_v10 }
  0x7b   :  { %1047 = vst.msk [vmem:[#allocation7 + $0x16] ss:$8 sm:$0x3] %vm1442_vm0, %v1010_v3  ;;  %v1031_v15 = vrot.slane %v978_v5, %v1415_v9  ;;  %v1115_v6 = vadd.f32 %v1114_v52, %v1109_v7  ;;  %v1303_v16 = vrot.slane %v1065_v11, 9  ;;  %v1060_v17 = vmul.f32 %v1056_v38, %v1433_v19 }
  0x7c   :  { %1050 = vst.msk [vmem:[#allocation7 + $0x26] ss:$8 sm:$0x3] %vm1442_vm0, %v1024_v0  ;;  %v1110_v18 = vadd.f32 %v1307_v13, %v1084_v12  ;;  %v1308_v20 = vrot.slane %v1091_v14, 10  ;;  %v1066_v21 = vmul.f32 %v1062_v39, %v1433_v19  ;;  %v1092_v22 = vmul.f32 %v1088_v50, %v1433_v19 }
  0x7d   :  { %v1038_v10 = vrot.slane %v1031_v15, %v1415_v9  ;;  %v1119_v23 = vmax.f32 %v1115_v6, 0.0  ;;  %v1085_v8 = vadd.f32 %v1303_v16, %v1059_v2 }
  0x7e   :  { %v1116_v25 = vadd.f32 %v1114_v52, %v1110_v18  ;;  %v1304_v26 = vrot.slane %v1066_v21, 9  ;;  %v1309_v27 = vrot.slane %v1092_v22, 10 }
  0x7f   :  { %1053 = vst.msk [vmem:[#allocation7 + $0x36] ss:$8 sm:$0x3] %vm1442_vm0, %v1038_v10  ;;  %v1133_v28 = vrot.slane %v1119_v23, %v1415_v9  ;;  %v1111_v29 = vadd.f32 %v1308_v20, %v1085_v8 }
  0x80   :  { %v1120_v30 = vmax.f32 %v1116_v25, 0.0  ;;  %v1086_v24 = vadd.f32 %v1304_v26, %v1060_v17 }
  0x81   :  { %v1140_v33 = vrot.slane %v1133_v28, %v1415_v9  ;;  %v1117_v34 = vadd.f32 %v1114_v52, %v1111_v29 }
  0x82   :  { %v1147_v19 = vrot.slane %v1120_v30, %v1415_v9  ;;  %v1112_v35 = vadd.f32 %v1309_v27, %v1086_v24 }
  0x83   :  { %1188 = vst.msk [vmem:[#allocation7 + $0x7] ss:$8 sm:$0x3] %vm1442_vm0, %v1140_v33  ;;  %v1121_v36 = vmax.f32 %v1117_v34, 0.0 }
  0x84   :  { %v1154_v37 = vrot.slane %v1147_v19, %v1415_v9  ;;  %v1118_v38 = vadd.f32 %v1114_v52, %v1112_v35 }
  0x85   :  { %v1161_v39 = vrot.slane %v1121_v36, %v1415_v9 }
  0x86   :  { %1191 = vst.msk [vmem:[#allocation7 + $0x17] ss:$8 sm:$0x3] %vm1442_vm0, %v1154_v37  ;;  %v1122_v40 = vmax.f32 %v1118_v38, 0.0 }
  0x87   :  { %v1168_v41 = vrot.slane %v1161_v39, %v1415_v9 }
  0x88   :  { %v1175_v42 = vrot.slane %v1122_v40, %v1415_v9 }
  0x89   :  { %1194 = vst.msk [vmem:[#allocation7 + $0x27] ss:$8 sm:$0x3] %vm1442_vm0, %v1168_v41 }
  0x8a   :  { %v1182_v43 = vrot.slane %v1175_v42, %v1415_v9 }
  0x8c   :  { %1197 = vst.msk [vmem:[#allocation7 + $0x37] ss:$8 sm:$0x3] %vm1442_vm0, %v1182_v43 }
  0x8d   :  { %1352 = shalt.err (!%p1349_p0)
}
  0x8e   :  { %s1353_s8 = scalar_lea.hbm %s1786_s3, 1024 }
  0x8f   :  { %p1354_p1 = scmp.ne.s32.totalorder %s1786_s3, %s1353_s8  ;;  %p1357_p2 = scmp.lt.u32.totalorder %s1353_s8, %s1786_s3 }
  0x91   :  { %p1359_p3 = pnand %p1357_p2, %p1354_p1 }
  0x93   :  { %1362 = shalt.err (!%p1359_p3)
}
  0x94   :  { %s1373_s12 = smov 256   ;;  %s1374_s13 = smov 16  }
  0x95   :  { %1210 = dma.vmem_to_hbm [thread:$0]  %s1205_s4, 1024, %s1786_s3, [#allocation3], %s1373_s12, %s1373_s12, %s1374_s13  }
  0x96   :  { %1367 = dma.done.wait [#allocation3], 1024  }
  0x97   :  { %1368 = vsyncadd [#allocation3], 4294966272 }
  0x98   :  { %1214 = vsyncpa [#allocation3], 1 }
  0x99   :  { %1215 = vsyncpa [#allocation4], 1 }
  0x9a   :  { %1216 = vsyncpa [#allocation6], 1 }

</bundles_post_ra>
